<compile_context>
chip_gen: v7x
topology: tpu7x:2x2x1
jax: 0.10.0
libtpu: 0.0.40
codegen_flags: <defaults>
</compile_context>

<pallas_src>
import functools

import jax
import jax.numpy as jnp
from jax.experimental import pallas as pl
from jax.experimental.pallas import tpu as pltpu


def _dice_kernel(labels_ref, logits_ref, inter_ref, psum_ref, tsum_ref,
                 *, hw, tile_hw, chunks_per_split, any_tail):
    sp = pl.program_id(0)   # pixel-range split (v7x two-core parallelism)
    j = pl.program_id(2)    # pixel chunk within the split (reduction axis)

    # Output blocks map to the same (sp, n, 0, 0) tile for every chunk j, so
    # they stay resident in VMEM and act as per-(split, batch) accumulators.
    @pl.when(j == 0)
    def _():
        inter_ref[...] = jnp.zeros_like(inter_ref)
        psum_ref[...] = jnp.zeros_like(psum_ref)
        tsum_ref[...] = jnp.zeros_like(tsum_ref)

    gj = sp * chunks_per_split + j      # global pixel-chunk index

    # (C, T): classes on sublanes, pixels on the 128-wide lane axis.
    logits = logits_ref[0].astype(jnp.float32)
    c, t = logits.shape
    labels = labels_ref[0].astype(jnp.int32)           # (1, T), int8 -> int32

    def accumulate(masked):
        x = logits
        if masked:
            lane = jax.lax.broadcasted_iota(jnp.int32, (1, t), 1)
            valid = (gj * tile_hw + lane) < hw          # (1, T) bool
            x = jnp.where(valid, x, 0.0)                # sanitize garbage
            vmask = valid.astype(jnp.float32)

        # softmax over the class (sublane) axis (from_logits=True);
        # one reciprocal per pixel column instead of C divides.
        m = jnp.max(x, axis=0, keepdims=True)           # (1, T)
        e = jnp.exp(x - m)
        denom = jnp.sum(e, axis=0, keepdims=True)       # (1, T)
        p = e * pl.reciprocal(denom, approx=False)      # (C, T)

        # one-hot of integer labels, classes on sublanes
        class_ids = jax.lax.broadcasted_iota(jnp.int32, (c, t), 0)
        onehot = (labels == class_ids).astype(jnp.float32)   # (C, T)

        if masked:
            p = p * vmask
            onehot = onehot * vmask

        inter_ref[0, 0] += jnp.sum(p * onehot, axis=1, keepdims=True)  # (C,1)
        psum_ref[0, 0] += jnp.sum(p, axis=1, keepdims=True)
        tsum_ref[0, 0] += jnp.sum(onehot, axis=1, keepdims=True)

    full_chunks = hw // tile_hw   # chunks that never overrun H*W
    if any_tail:
        # Only the (few) overrunning blocks pay the masking cost; pl.when cold
        # paths are free at runtime.
        @pl.when(gj >= full_chunks)
        def _():
            accumulate(masked=True)

        @pl.when(gj < full_chunks)
        def _():
            accumulate(masked=False)
    else:
        accumulate(masked=False)


def _pick_tile_hw(c, hw, logit_bytes, label_bytes, target_bytes=4 << 20):
    """Largest lane-aligned pixel tile targeting ~4 MiB of (logits+labels)."""
    hw_up = ((hw + 127) // 128) * 128
    per_pixel = c * logit_bytes + label_bytes
    tile = max(128, (target_bytes // per_pixel) // 128 * 128)
    return int(min(tile, hw_up))


@functools.partial(jax.jit, static_argnames=("smooth", "eps", "tile_hw"))
def dice_loss(y_pred, y_true, smooth=0.0, eps=1e-7, tile_hw=None):
    """y_pred: (N, C, H, W) float logits; y_true: (N, H, W) int labels."""
    n, c, h, w = y_pred.shape
    hw = h * w

    # Native layout: contiguous reshapes only (no HBM transpose copy).
    logits = y_pred.reshape(n, c, hw)

    # int8 labels (valid whenever C <= 127) cut label traffic 4x.
    label_dtype = jnp.int8 if c <= 127 else jnp.int32
    labels = y_true.reshape(n, 1, hw).astype(label_dtype)

    logit_bytes = jnp.dtype(y_pred.dtype).itemsize
    label_bytes = jnp.dtype(label_dtype).itemsize
    if tile_hw is None:
        tile_hw = _pick_tile_hw(c, hw, logit_bytes, label_bytes)

    chunks_total = (hw + tile_hw - 1) // tile_hw
    n_splits = 2 if chunks_total >= 2 else 1
    chunks_per_split = (chunks_total + n_splits - 1) // n_splits
    # True iff some block (tail or padded-out split chunk) overruns H*W.
    any_tail = n_splits * chunks_per_split * tile_hw > hw

    grid = (n_splits, n, chunks_per_split)

    def in_pix_index(sp, i, j):
        gj = sp * chunks_per_split + j
        # Clamp fully-out-of-range chunks onto the last real chunk; their
        # contribution is zeroed in-kernel by the tail mask.
        return (i, 0, jnp.minimum(gj, chunks_total - 1))

    out_sd = jax.ShapeDtypeStruct((n_splits, n, c, 1), jnp.float32)
    kernel = functools.partial(
        _dice_kernel, hw=hw, tile_hw=tile_hw,
        chunks_per_split=chunks_per_split, any_tail=any_tail)

    # Right-size VMEM: 2x double-buffered input blocks + tiny accumulators,
    # with headroom; stays well under v7x's 64 MiB per-TC VMEM.
    block_bytes = tile_hw * (c * logit_bytes + label_bytes)
    vmem_limit = int(min(48 << 20, max(16 << 20, 4 * block_bytes)))

    inter_p, psum_p, tsum_p = pl.pallas_call(
        kernel,
        out_shape=(out_sd, out_sd, out_sd),
        grid_spec=pltpu.PrefetchScalarGridSpec(
            num_scalar_prefetch=0,
            grid=grid,
            in_specs=[
                pl.BlockSpec((1, 1, tile_hw), in_pix_index),
                pl.BlockSpec((1, c, tile_hw), in_pix_index),
            ],
            out_specs=[
                pl.BlockSpec((1, 1, c, 1), lambda sp, i, j: (sp, i, 0, 0)),
                pl.BlockSpec((1, 1, c, 1), lambda sp, i, j: (sp, i, 0, 0)),
                pl.BlockSpec((1, 1, c, 1), lambda sp, i, j: (sp, i, 0, 0)),
            ],
        ),
        compiler_params=pltpu.CompilerParams(
            dimension_semantics=("parallel", "parallel", "arbitrary"),
            vmem_limit_bytes=vmem_limit,
        ),
    )(labels, logits)

    # Reduce per-(split, batch) partials (also where the v7x 2-TC split and
    # megacore batch sharding are merged).
    inter = jnp.sum(inter_p[..., 0], axis=(0, 1))
    psum = jnp.sum(psum_p[..., 0], axis=(0, 1))
    tsum = jnp.sum(tsum_p[..., 0], axis=(0, 1))

    cardinality = psum + tsum
    scores = (2.0 * inter + smooth) / jnp.maximum(cardinality + smooth, eps)
    loss = 1.0 - scores
    present = (tsum > 0).astype(loss.dtype)   # zero-out classes absent in y_true
    return jnp.mean(loss * present)


def _dice_loss_ref(y_pred, y_true, smooth=0.0, eps=1e-7):
    """Pure-JAX reference mirroring smp.losses.DiceLoss(multiclass)."""
    n, c, h, w = y_pred.shape
    p = jax.nn.softmax(y_pred.astype(jnp.float32), axis=1).reshape(n, c, h * w)
    t = jax.nn.one_hot(y_true.reshape(n, h * w), c, dtype=p.dtype)
    t = jnp.transpose(t, (0, 2, 1))                       # (N, C, HW)
    dims = (0, 2)
    inter = jnp.sum(p * t, axis=dims)
    card = jnp.sum(p + t, axis=dims)
    scores = (2.0 * inter + smooth) / jnp.maximum(card + smooth, eps)
    loss = 1.0 - scores
    mask = (jnp.sum(t, axis=dims) > 0).astype(loss.dtype)
    return jnp.mean(loss * mask)


if __name__ == "__main__":
    key = jax.random.PRNGKey(0)
    k1, k2, k3, k4, k5, k6 = jax.random.split(key, 6)

    # Case 1: H*W divisible by 128, single chunk (no masking compiled in).
    N, C, H, W = 2, 4, 16, 16
    y_pred = jax.random.normal(k1, (N, C, H, W), dtype=jnp.float32)
    y_true = jax.random.randint(k2, (N, H, W), 0, C, dtype=jnp.int32)
    out = dice_loss(y_pred, y_true)
    jax.block_until_ready(out)
    ref = _dice_loss_ref(y_pred, y_true)
    assert jnp.allclose(out, ref, atol=1e-5, rtol=1e-5), (out, ref)

    # Case 2: H*W not a multiple of 128 -> exercises the in-kernel tail mask.
    N2, C2, H2, W2 = 2, 3, 12, 12
    y_pred2 = jax.random.normal(k3, (N2, C2, H2, W2), dtype=jnp.float32)
    y_true2 = jax.random.randint(k4, (N2, H2, W2), 0, C2, dtype=jnp.int32)
    out2 = dice_loss(y_pred2, y_true2)
    jax.block_until_ready(out2)
    ref2 = _dice_loss_ref(y_pred2, y_true2)
    assert jnp.allclose(out2, ref2, atol=1e-5, rtol=1e-5), (out2, ref2)

    # Case 3: forced small tile -> multi-chunk accumulation, pixel-range
    # split across the parallel axis, odd chunk count (clamped OOB block),
    # and the gated tail mask, all exercised at N=1.
    N3, C3, H3, W3 = 1, 5, 25, 25
    y_pred3 = jax.random.normal(k5, (N3, C3, H3, W3), dtype=jnp.float32)
    y_true3 = jax.random.randint(k6, (N3, H3, W3), 0, C3, dtype=jnp.int32)
    out3 = dice_loss(y_pred3, y_true3, tile_hw=128)
    jax.block_until_ready(out3)
    ref3 = _dice_loss_ref(y_pred3, y_true3)
    assert jnp.allclose(out3, ref3, atol=1e-5, rtol=1e-5), (out3, ref3)

    print("KERNEL_OK")
</pallas_src>

<mosaic_0001>
module attributes {stable_mosaic.version = 11 : i64} {
  func.func @_dice_kernel(%arg0: i32, %arg1: i32, %arg2: i32, %arg3: memref<1x1x256xi8, #tpu.memory_space<vmem>>, %arg4: memref<1x4x256xf32, #tpu.memory_space<vmem>>, %arg5: memref<1x1x4x1xf32, #tpu.memory_space<vmem>>, %arg6: memref<1x1x4x1xf32, #tpu.memory_space<vmem>>, %arg7: memref<1x1x4x1xf32, #tpu.memory_space<vmem>>) attributes {dimension_semantics = [#tpu.dimension_semantics<parallel>, #tpu.dimension_semantics<parallel>, #tpu.dimension_semantics<arbitrary>], iteration_bounds = array<i64: 1, 2, 1>, scalar_prefetch = 0 : i64, scratch_operands = 0 : i64, tpu.core_type = #tpu.core_type<tc>, window_params = [{transform_indices = @transform_0, window_bounds = array<i64: 1, 1, 256>}, {transform_indices = @transform_1, window_bounds = array<i64: 1, 4, 256>}, {transform_indices = @transform_2, window_bounds = array<i64: 1, 1, 4, 1>}, {transform_indices = @transform_3, window_bounds = array<i64: 1, 1, 4, 1>}, {transform_indices = @transform_4, window_bounds = array<i64: 1, 1, 4, 1>}]} {
    %c0_i32 = arith.constant 0 : i32
    %0 = arith.cmpi eq, %arg2, %c0_i32 : i32
    %1 = arith.extui %0 : i1 to i32
    %c0_i32_0 = arith.constant 0 : i32
    %2 = arith.cmpi ne, %1, %c0_i32_0 : i32
    scf.if %2 {
      %cst_34 = arith.constant 0.000000e+00 : f32
      %48 = vector.broadcast %cst_34 : f32 to vector<1x1x4x1xf32>
      %c0_35 = arith.constant 0 : index
      %c0_36 = arith.constant 0 : index
      %c0_37 = arith.constant 0 : index
      %c0_38 = arith.constant 0 : index
      %49 = vector.load %arg5[%c0_35, %c0_36, %c0_37, %c0_38] : memref<1x1x4x1xf32, #tpu.memory_space<vmem>>, vector<1x1x4x1xf32>
      tpu.vector_store %arg5[%c0_35, %c0_36, %c0_37, %c0_38], %48 {strides = array<i32>} : memref<1x1x4x1xf32, #tpu.memory_space<vmem>>, vector<1x1x4x1xf32>,
      %cst_39 = arith.constant 0.000000e+00 : f32
      %50 = vector.broadcast %cst_39 : f32 to vector<1x1x4x1xf32>
      %c0_40 = arith.constant 0 : index
      %c0_41 = arith.constant 0 : index
      %c0_42 = arith.constant 0 : index
      %c0_43 = arith.constant 0 : index
      %51 = vector.load %arg6[%c0_40, %c0_41, %c0_42, %c0_43] : memref<1x1x4x1xf32, #tpu.memory_space<vmem>>, vector<1x1x4x1xf32>
      tpu.vector_store %arg6[%c0_40, %c0_41, %c0_42, %c0_43], %50 {strides = array<i32>} : memref<1x1x4x1xf32, #tpu.memory_space<vmem>>, vector<1x1x4x1xf32>,
      %cst_44 = arith.constant 0.000000e+00 : f32
      %52 = vector.broadcast %cst_44 : f32 to vector<1x1x4x1xf32>
      %c0_45 = arith.constant 0 : index
      %c0_46 = arith.constant 0 : index
      %c0_47 = arith.constant 0 : index
      %c0_48 = arith.constant 0 : index
      %53 = vector.load %arg7[%c0_45, %c0_46, %c0_47, %c0_48] : memref<1x1x4x1xf32, #tpu.memory_space<vmem>>, vector<1x1x4x1xf32>
      tpu.vector_store %arg7[%c0_45, %c0_46, %c0_47, %c0_48], %52 {strides = array<i32>} : memref<1x1x4x1xf32, #tpu.memory_space<vmem>>, vector<1x1x4x1xf32>,
    } else {
    }
    %c0 = arith.constant 0 : index
    %c0_1 = arith.constant 0 : index
    %c0_2 = arith.constant 0 : index
    %3 = vector.load %arg4[%c0, %c0_1, %c0_2] : memref<1x4x256xf32, #tpu.memory_space<vmem>>, vector<1x4x256xf32>
    %4 = vector.shape_cast %3 : vector<1x4x256xf32> to vector<4x256xf32>
    %c0_3 = arith.constant 0 : index
    %c0_4 = arith.constant 0 : index
    %c0_5 = arith.constant 0 : index
    %5 = vector.load %arg3[%c0_3, %c0_4, %c0_5] : memref<1x1x256xi8, #tpu.memory_space<vmem>>, vector<1x1x256xi8>
    %6 = vector.shape_cast %5 : vector<1x1x256xi8> to vector<1x256xi8>
    %7 = arith.extsi %6 : vector<1x256xi8> to vector<1x256xi32>
    %cst = arith.constant dense<0xFF800000> : vector<256xf32>
    %8 = vector.multi_reduction <maximumf>, %4, %cst [0] : vector<4x256xf32> to vector<256xf32>
    %9 = vector.shape_cast %8 : vector<256xf32> to vector<1x256xf32>
    %10 = vector.broadcast %9 : vector<1x256xf32> to vector<4x256xf32>
    %11 = arith.subf %4, %10 : vector<4x256xf32>
    %12 = math.exp %11 : vector<4x256xf32>
    %cst_6 = arith.constant dense<0.000000e+00> : vector<256xf32>
    %13 = vector.multi_reduction <add>, %12, %cst_6 [0] : vector<4x256xf32> to vector<256xf32>
    %14 = vector.shape_cast %13 : vector<256xf32> to vector<1x256xf32>
    %15 = tpu.reciprocal %14 : vector<1x256xf32> -> vector<1x256xf32>
    %16 = vector.broadcast %15 : vector<1x256xf32> to vector<4x256xf32>
    %17 = arith.mulf %12, %16 : vector<4x256xf32>
    %18 = tpu.iota {dimensions = array<i32: 0>} : vector<4x256xi32>
    %19 = vector.broadcast %7 : vector<1x256xi32> to vector<4x256xi32>
    %20 = arith.cmpi eq, %19, %18 : vector<4x256xi32>
    %21 = arith.extui %20 : vector<4x256xi1> to vector<4x256xi32>
    %22 = arith.sitofp %21 : vector<4x256xi32> to vector<4x256xf32>
    %c0_7 = arith.constant 0 : index
    %c0_8 = arith.constant 0 : index
    %c0_9 = arith.constant 0 : index
    %c0_10 = arith.constant 0 : index
    %23 = vector.load %arg5[%c0_7, %c0_8, %c0_9, %c0_10] : memref<1x1x4x1xf32, #tpu.memory_space<vmem>>, vector<1x1x4x1xf32>
    %24 = vector.shape_cast %23 : vector<1x1x4x1xf32> to vector<4x1xf32>
    %25 = arith.mulf %17, %22 : vector<4x256xf32>
    %cst_11 = arith.constant dense<0.000000e+00> : vector<4xf32>
    %26 = vector.multi_reduction <add>, %25, %cst_11 [1] : vector<4x256xf32> to vector<4xf32>
    %27 = vector.shape_cast %26 : vector<4xf32> to vector<4x1xf32>
    %28 = arith.addf %24, %27 : vector<4x1xf32>
    %c0_12 = arith.constant 0 : index
    %c0_13 = arith.constant 0 : index
    %c0_14 = arith.constant 0 : index
    %c0_15 = arith.constant 0 : index
    %29 = vector.load %arg5[%c0_12, %c0_13, %c0_14, %c0_15] : memref<1x1x4x1xf32, #tpu.memory_space<vmem>>, vector<1x1x4x1xf32>
    %30 = vector.shape_cast %29 : vector<1x1x4x1xf32> to vector<4x1xf32>
    %31 = vector.shape_cast %28 : vector<4x1xf32> to vector<1x1x4x1xf32>
    tpu.vector_store %arg5[%c0_12, %c0_13, %c0_14, %c0_15], %31 {strides = array<i32>} : memref<1x1x4x1xf32, #tpu.memory_space<vmem>>, vector<1x1x4x1xf32>,
    %c0_16 = arith.constant 0 : index
    %c0_17 = arith.constant 0 : index
    %c0_18 = arith.constant 0 : index
    %c0_19 = arith.constant 0 : index
    %32 = vector.load %arg6[%c0_16, %c0_17, %c0_18, %c0_19] : memref<1x1x4x1xf32, #tpu.memory_space<vmem>>, vector<1x1x4x1xf32>
    %33 = vector.shape_cast %32 : vector<1x1x4x1xf32> to vector<4x1xf32>
    %cst_20 = arith.constant dense<0.000000e+00> : vector<4xf32>
    %34 = vector.multi_reduction <add>, %17, %cst_20 [1] : vector<4x256xf32> to vector<4xf32>
    %35 = vector.shape_cast %34 : vector<4xf32> to vector<4x1xf32>
    %36 = arith.addf %33, %35 : vector<4x1xf32>
    %c0_21 = arith.constant 0 : index
    %c0_22 = arith.constant 0 : index
    %c0_23 = arith.constant 0 : index
    %c0_24 = arith.constant 0 : index
    %37 = vector.load %arg6[%c0_21, %c0_22, %c0_23, %c0_24] : memref<1x1x4x1xf32, #tpu.memory_space<vmem>>, vector<1x1x4x1xf32>
    %38 = vector.shape_cast %37 : vector<1x1x4x1xf32> to vector<4x1xf32>
    %39 = vector.shape_cast %36 : vector<4x1xf32> to vector<1x1x4x1xf32>
    tpu.vector_store %arg6[%c0_21, %c0_22, %c0_23, %c0_24], %39 {strides = array<i32>} : memref<1x1x4x1xf32, #tpu.memory_space<vmem>>, vector<1x1x4x1xf32>,
    %c0_25 = arith.constant 0 : index
    %c0_26 = arith.constant 0 : index
    %c0_27 = arith.constant 0 : index
    %c0_28 = arith.constant 0 : index
    %40 = vector.load %arg7[%c0_25, %c0_26, %c0_27, %c0_28] : memref<1x1x4x1xf32, #tpu.memory_space<vmem>>, vector<1x1x4x1xf32>
    %41 = vector.shape_cast %40 : vector<1x1x4x1xf32> to vector<4x1xf32>
    %cst_29 = arith.constant dense<0.000000e+00> : vector<4xf32>
    %42 = vector.multi_reduction <add>, %22, %cst_29 [1] : vector<4x256xf32> to vector<4xf32>
    %43 = vector.shape_cast %42 : vector<4xf32> to vector<4x1xf32>
    %44 = arith.addf %41, %43 : vector<4x1xf32>
    %c0_30 = arith.constant 0 : index
    %c0_31 = arith.constant 0 : index
    %c0_32 = arith.constant 0 : index
    %c0_33 = arith.constant 0 : index
    %45 = vector.load %arg7[%c0_30, %c0_31, %c0_32, %c0_33] : memref<1x1x4x1xf32, #tpu.memory_space<vmem>>, vector<1x1x4x1xf32>
    %46 = vector.shape_cast %45 : vector<1x1x4x1xf32> to vector<4x1xf32>
    %47 = vector.shape_cast %44 : vector<4x1xf32> to vector<1x1x4x1xf32>
    tpu.vector_store %arg7[%c0_30, %c0_31, %c0_32, %c0_33], %47 {strides = array<i32>} : memref<1x1x4x1xf32, #tpu.memory_space<vmem>>, vector<1x1x4x1xf32>,
    return
  }
  func.func @transform_0(%arg0: i32, %arg1: i32, %arg2: i32) -> (i32, i32, i32) {
    %c1_i32 = arith.constant 1 : i32
    %0 = arith.muli %arg0, %c1_i32 : i32
    %1 = arith.addi %0, %arg2 : i32
    %c0_i32 = arith.constant 0 : i32
    %2 = arith.minsi %1, %c0_i32 : i32
    %c0_i32_0 = arith.constant 0 : i32
    %c0_i32_1 = arith.constant 0 : i32
    return %arg1, %c0_i32_0, %2 : i32, i32, i32
  }
  func.func @transform_1(%arg0: i32, %arg1: i32, %arg2: i32) -> (i32, i32, i32) {
    %c1_i32 = arith.constant 1 : i32
    %0 = arith.muli %arg0, %c1_i32 : i32
    %1 = arith.addi %0, %arg2 : i32
    %c0_i32 = arith.constant 0 : i32
    %2 = arith.minsi %1, %c0_i32 : i32
    %c0_i32_0 = arith.constant 0 : i32
    %c0_i32_1 = arith.constant 0 : i32
    return %arg1, %c0_i32_0, %2 : i32, i32, i32
  }
  func.func @transform_2(%arg0: i32, %arg1: i32, %arg2: i32) -> (i32, i32, i32, i32) {
    %c0_i32 = arith.constant 0 : i32
    %c0_i32_0 = arith.constant 0 : i32
    %c0_i32_1 = arith.constant 0 : i32
    return %arg0, %arg1, %c0_i32, %c0_i32_0 : i32, i32, i32, i32
  }
  func.func @transform_3(%arg0: i32, %arg1: i32, %arg2: i32) -> (i32, i32, i32, i32) {
    %c0_i32 = arith.constant 0 : i32
    %c0_i32_0 = arith.constant 0 : i32
    %c0_i32_1 = arith.constant 0 : i32
    return %arg0, %arg1, %c0_i32, %c0_i32_0 : i32, i32, i32, i32
  }
  func.func @transform_4(%arg0: i32, %arg1: i32, %arg2: i32) -> (i32, i32, i32, i32) {
    %c0_i32 = arith.constant 0 : i32
    %c0_i32_0 = arith.constant 0 : i32
    %c0_i32_1 = arith.constant 0 : i32
    return %arg0, %arg1, %c0_i32, %c0_i32_0 : i32, i32, i32, i32
  }
}

</mosaic_0001>

<bundles_post_ra>
// kernel: dice_loss.1
= control target key start
LH: loop header
LB: loop body
LE: loop exit
PB: predicated region body
PF: predicated region fallthrough
CT: control target
= control target key end

     0   :  { %s770_s15 = smov 0   ;;  %s772_s16 = smov 0   ;;  %s843_s0 = inlined_call_operand.vmem [shape: s8[2,1,256], index: 0, kind: input, shape index: {}]   ;;  %s844_s1 = inlined_call_operand.vmem [shape: f32[2,4,256], index: 1, kind: input, shape index: {}]   ;;  %s845_s2 = inlined_call_operand.vmem [shape: f32[1,2,4,1], index: 2, kind: output, shape index: {0}]   ;;  %s846_s3 = inlined_call_operand.vmem [shape: f32[1,2,4,1], index: 3, kind: output, shape index: {1}]   ;;  %s847_s4 = inlined_call_operand.vmem [shape: f32[1,2,4,1], index: 4, kind: output, shape index: {2}]  }
   0x1   :  { %s774_s17 = smov 0  }
   0x2 LB: > { %s30_s18 = sadd.s32 1, %s738_s16  ;;  %p676_p0 = scmp.ge.s32.totalorder %s742_s17, 1  ;;  %s742_s17 = sphi %s774_s17, %s15_s17   ;;  %s738_s16 = sphi %s772_s16, %s849_s16   ;;  %s734_s15 = sphi %s770_s15, %s848_s15  }
   0x3   : > { %p32_p1 = scmp.ge.s32.totalorder %s30_s18, 2  ;;  %p239_p2 = scmp.lt.s32.totalorder %s742_s17, 3 }
   0x5   : > { %s851_s18 = smov (%p32_p1, %s30_s18), 0  ;;  %p240_p3 = pnand %p676_p0, %p239_p2 }
   0x6   : > { %p306_p4 = scmp.lt.s32.totalorder (!%p240_p3), %s734_s15, 1  ;;  %v417_v0 = vlaneseq (!%p240_p3)  ;;  %vm371_vm0 = vcmask (!%p240_p3), 1043456   ;;  %vm361_vm1 = vcmask (!%p240_p3), 3072   ;;  %v744_v10 = vmov (!%p240_p3), 0.0  }
   0x7   : > { %243 = sbr.rel (%p240_p3) target bundleno = 236 (0xec), region = 28 }
   0x8   : > { %v418_v1 = vshrl.u32 (!%p240_p3), %v417_v0, 7 }
   0xa   : > { %v421_v2 = vsub.s32 (!%p240_p3), 0, %v418_v1  ;;  %v425_v3 = vsub.s32 (!%p240_p3), 4, %v418_v1 }
   0xe   : > { %s853_s15 = smov (!%p306_p4, %s734_s15), 1 }
   0xf   : > { %s677_s19 = sshll.u32 %s853_s15, 1  ;;  %s687_s20 = sshll.u32 %s853_s15, 3 }
  0x10   : > { %s312_s23 = scalar_lea.vmem %s843_s0, %s677_s19  ;;  %s328_s26 = scalar_lea.vmem %s844_s1, %s687_s20 }
  0x11   : > { %v365_v4 = vld [vmem:[%s328_s26] sm:$0xff]  ;;  %s794_s27 = sshll.u32 %s853_s15, 2 }
  0x12   : > { %v366_v5 = vld [vmem:[%s312_s23] sm:$0x3]  ;;  %v369_v7 = vcombine.high %v365_v4, %v365_v4  ;;  %v372_v8 = vsel %vm371_vm0, %v365_v4, -inf  ;;  %s801_s30 = scalar_lea.vmem %s845_s2, %s794_s27  ;;  %s356_s7 = scalar_lea.vmem %s847_s4, %s794_s27 }
  0x13   : > { %v367_v6 = vunpack.c.0.s8 %v366_v5  ;;  %v373_v9 = vrot.slane %v372_v8, 4  ;;  %362 = vst.msk [vmem:[%s801_s30] sm:$0xf] %vm361_vm1, %v744_v10  ;;  %s348_s10 = scalar_lea.vmem %s846_s3, %s794_s27  ;;  %364 = vst.msk [vmem:[%s356_s7] sm:$0xf] %vm361_vm1, %v744_v10 }
  0x14   : > { %v379_v11 = vsel %vm371_vm0, %v369_v7, -inf  ;;  %363 = vst.msk [vmem:[%s348_s10] sm:$0xf] %vm361_vm1, %v744_v10 }
  0x15   : > { %v422_v12 = vrot.slane %v367_v6, %v421_v2  ;;  %v426_v13 = vrot.slane %v367_v6, %v425_v3  ;;  %v374_v14 = vmax.f32 %v372_v8, %v373_v9  ;;  %v380_v15 = vrot.slane %v379_v11, 4 }
  0x17   : > { %v430_v16 = vrot.slane %v422_v12, %v421_v2  ;;  %v434_v17 = vrot.slane %v426_v13, %v421_v2  ;;  %v375_v18 = vrot.slane %v374_v14, 2  ;;  %v381_v19 = vmax.f32 %v379_v11, %v380_v15 }
  0x19   : > { %vm435_vm2 = vcmp.eq.s32.totalorder %v430_v16, %v418_v1  ;;  %vm436_vm3 = vcmp.eq.s32.totalorder %v434_v17, %v418_v1  ;;  %v376_v20 = vmax.f32 %v374_v14, %v375_v18  ;;  %v382_v21 = vrot.slane %v381_v19, 2 }
  0x1a   : > { %v683_v22 = vsel %vm435_vm2, 1.0, %v744_v10  ;;  %v684_v23 = vsel %vm436_vm3, 1.0, %v744_v10  ;;  %v469_v1 = vld [vmem:[%s356_s7] sm:$0xf] }
  0x1b   : > { %v470_v24 = vsel %vm371_vm0, %v683_v22, 0.0  ;;  %v471_v25 = vsel %vm371_vm0, %v684_v23, 0.0  ;;  %v377_v26 = vrot.slane %v376_v20, 1  ;;  %v383_v27 = vmax.f32 %v381_v19, %v382_v21  ;;  %v458_v7 = vld [vmem:[%s348_s10] sm:$0xf] }
  0x1c   : > { %v472_v28 = vadd.f32 %v471_v25, %v470_v24  ;;  %v444_v54 = vcombine.low %v683_v22, %v684_v23 }
  0x1d   : > { %v378_v29 = vmax.f32 %v376_v20, %v377_v26  ;;  %v384_v30 = vrot.slane %v383_v27, 1 }
  0x1e   : > { %473 = vadd.xlane.f32.xlu1 %v472_v28 }
  0x1f   : > { %v385_v31 = vmax.f32 %v383_v27, %v384_v30 }
  0x21   : > { %v388_v32 = vcombine.low %v378_v29, %v385_v31 }
  0x23   : > { %v390_v33 = vsub.f32 %v365_v4, %v388_v32  ;;  %v441_v4 = vld [vmem:[%s801_s30] sm:$0xf] }
  0x25   : > { %v391_v34 = vmul.f32 1.442695, %v390_v33 }
  0x27   : > { %714 = vpow2.f32 %v391_v34 }
  0x31   : > { %v715_v35 = vpop.eup %714 }
  0x32   : > { %v394_v36 = vcombine.high %v715_v35, %v715_v35  ;;  %v396_v37 = vsel %vm371_vm0, %v715_v35, 0.0 }
  0x33   : > { %v397_v38 = vrot.slane %v396_v37, 4 }
  0x34   : > { %v403_v39 = vsel %vm371_vm0, %v394_v36, 0.0 }
  0x35   : > { %v398_v40 = vadd.f32 %v397_v38, %v396_v37  ;;  %v404_v41 = vrot.slane %v403_v39, 4 }
  0x37   : > { %v399_v42 = vrot.slane %v398_v40, 2  ;;  %v405_v43 = vadd.f32 %v404_v41, %v403_v39 }
  0x39   : > { %v400_v44 = vadd.f32 %v399_v42, %v398_v40  ;;  %v406_v45 = vrot.slane %v405_v43, 2 }
  0x3b   : > { %v401_v46 = vrot.slane %v400_v44, 1  ;;  %v407_v47 = vadd.f32 %v406_v45, %v405_v43 }
  0x3d   : > { %v402_v48 = vadd.f32 %v401_v46, %v400_v44  ;;  %v408_v49 = vrot.slane %v407_v47, 1 }
  0x3f   : > { %v409_v50 = vadd.f32 %v408_v49, %v407_v47  ;;  %716 = vrcp.f32 %v402_v48 }
  0x41   : > { %718 = vrcp.f32 %v409_v50 }
  0x49   : > { %v717_v51 = vpop.eup %716 }
  0x4b   : > { %v719_v52 = vpop.eup %718 }
  0x4c   : > { %v414_v53 = vcombine.low %v717_v51, %v719_v52 }
  0x4e   : > { %v416_v55 = vmul.f32 %v715_v35, %v414_v53 }
  0x50   : > { %v446_v56 = vmul.f32 %v444_v54, %v416_v55  ;;  %v460_v57 = vcombine.high %v416_v55, %v416_v55  ;;  %v462_v61 = vsel %vm371_vm0, %v416_v55, 0.0 }
  0x52   : > { %v448_v58 = vcombine.high %v446_v56, %v446_v56  ;;  %v450_v59 = vsel %vm371_vm0, %v446_v56, 0.0  ;;  %v463_v62 = vsel %vm371_vm0, %v460_v57, 0.0 }
  0x53   : > { %v464_v0 = vadd.f32 %v463_v62, %v462_v61 }
  0x54   : > { %v451_v60 = vsel %vm371_vm0, %v448_v58, 0.0 }
  0x55   : > { %v452_v63 = vadd.f32 %v451_v60, %v450_v59 }
  0x57   : > { %453 = vadd.xlane.f32.xlu0 %v452_v63 }
  0x5b   : > { %465 = vadd.xlane.f32.xlu0 %v464_v0 }
  0xab   : > { %v474_v2 = vpop.xlane.xlu1 %473 }
  0xac   : > { %v475_v3 = vadd.f32 %v474_v2, %v469_v1 }
  0xae   : > { %476 = vst.msk [vmem:[%s356_s7] sm:$0xf] %vm361_vm1, %v475_v3 }
  0xe4   : > { %v454_v5 = vpop.xlane.xlu0 %453 }
  0xe5   : > { %v455_v6 = vadd.f32 %v454_v5, %v441_v4 }
  0xe7   : > { %457 = vst.msk [vmem:[%s801_s30] sm:$0xf] %vm361_vm1, %v455_v6 }
  0xe8   : > { %v466_v8 = vpop.xlane.xlu0 %465 }
  0xe9   : > { %v467_v9 = vadd.f32 %v466_v8, %v458_v7 }
  0xeb   : > { %468 = vst.msk [vmem:[%s348_s10] sm:$0xf] %vm361_vm1, %v467_v9 }
  0xec PF: > { %s15_s17 = sadd.s32 1, %s742_s17   ;;  %s848_s15 = smov %s738_s16 }
  0xed   : > { %p12_p5 = scmp.ge.s32.totalorder %s15_s17, 4   ;;  %s849_s16 = smov %s851_s18 }
  0xef   :  { %14 = sbr.rel (!%p12_p5) target bundleno = 2 (0x2), region = 89 }

</bundles_post_ra>
